<compile_context>
chip_gen: v7x
topology: tpu7x:2x2x1
jax: 0.10.0
libtpu: 0.0.40
codegen_flags: <defaults>
</compile_context>

<pallas_src>
import math

import jax
import jax.numpy as jnp
from jax.experimental import pallas as pl
from jax.experimental.pallas import tpu as pltpu


def _round_up(x, m):
    return ((x + m - 1) // m) * m


def _block_diag(w, p):
    """Replicate w (din, dout) into a (p*din, p*dout) block-diagonal matrix."""
    din, dout = w.shape
    eye = jnp.eye(p, dtype=w.dtype)
    return (eye[:, None, :, None] * w[None, :, None, :]).reshape(p * din, p * dout)


def _mlp_kernel(x_ref, w1_ref, b1_ref, w2_ref, b2_ref, w3_ref, b3_ref, o_ref):
    # Layer 1: Linear (f32 accumulation on MXU) + bias + ReLU in f32.
    h = jnp.dot(x_ref[...], w1_ref[...], preferred_element_type=jnp.float32)
    h = jnp.maximum(h + b1_ref[...], 0.0)
    # Dropout(p=0.2) between hidden layers is identity in inference mode.
    # TODO(synk): training-mode dropout (stochastic masking) not implemented.

    # Layer 2: Linear + bias + ReLU (operands cast back to the weight dtype).
    h = jnp.dot(h.astype(w2_ref.dtype), w2_ref[...],
                preferred_element_type=jnp.float32)
    h = jnp.maximum(h + b2_ref[...], 0.0)

    # Output layer: Linear, no activation. With batch packing the last dim is
    # p*d_out (128 for the default config) -> lane-dense unmasked store.
    y = jnp.dot(h.astype(w3_ref.dtype), w3_ref[...],
                preferred_element_type=jnp.float32)
    o_ref[...] = (y + b3_ref[...]).astype(o_ref.dtype)


def bp_mlp_forward(x, params, *, tile_n=4096, pack=8,
                   io_dtype=jnp.bfloat16, out_dtype=None):
    """Run the fused BP_MLP forward pass as a single Pallas kernel.

    x:         (N, input_size) array.
    params:    dict with w1 (Din,H1), b1 (1,H1), w2 (H1,H2), b2 (1,H2),
               w3 (H2,Dout), b3 (1,Dout)  (weights stored transposed vs PyTorch).
    tile_n:    batch tile in LOGICAL rows (default 4096; sweep 2048-8192).
    pack:      batch rows packed into the lane/contraction dim (8 for v6e/v7x
               256-wide MXU, 4 for v5e's 128-wide MXU).
    io_dtype:  dtype of matmul operands streamed from HBM (bf16 halves traffic;
               pass jnp.float32 for exact-f32 behavior).
    out_dtype: dtype written to HBM for the result (default: io_dtype).
    """
    N, d_in = x.shape
    out_dtype = io_dtype if out_dtype is None else out_dtype

    w1, b1 = params["w1"], params["b1"]
    w2, b2 = params["w2"], params["b2"]
    w3, b3 = params["w3"], params["b3"]
    d_out = w3.shape[1]

    # ---- Batch packing: block-diagonal weights, tiled biases. ----
    p = max(1, int(pack))
    w1p = _block_diag(w1.astype(io_dtype), p)            # (p*Din, p*H1)
    w2p = _block_diag(w2.astype(io_dtype), p)            # (p*H1,  p*H2)
    w3p = _block_diag(w3.astype(io_dtype), p)            # (p*H2,  p*Dout)
    b1p = jnp.tile(b1.astype(jnp.float32), (1, p))       # (1, p*H1)
    b2p = jnp.tile(b2.astype(jnp.float32), (1, p))       # (1, p*H2)
    b3p = jnp.tile(b3.astype(jnp.float32), (1, p))       # (1, p*Dout)

    # ---- Tile selection over packed rows. ----
    n_packed = -(-N // p)
    target = max(16, tile_n // p)
    if n_packed <= 16:
        tn_p = n_packed                       # single block == full array dim (legal)
    else:
        # Cap the tile so the 'parallel' grid has >=2 steps (keeps both v7x TCs fed);
        # 16-sublane multiple matches the bf16 native (16,128) tile.
        tn_p = min(target, _round_up(-(-n_packed // 2), 16))
    n_packed_pad = _round_up(n_packed, tn_p)
    n_rows_pad = n_packed_pad * p

    xc = x.astype(io_dtype)
    if n_rows_pad != N:
        # Cheap x-side pad for ragged batches. Padded rows produce ReLU(bias)
        # garbage that is sliced off below and never aliased into caller buffers.
        xc = jnp.pad(xc, ((0, n_rows_pad - N), (0, 0)))
    xp = xc.reshape(n_packed_pad, p * d_in)   # free contiguous reshape

    grid = (n_packed_pad // tn_p,)
    full = lambda a: pl.BlockSpec(a.shape, lambda i: (0, 0))

    yp = pl.pallas_call(
        _mlp_kernel,
        out_shape=jax.ShapeDtypeStruct((n_packed_pad, p * d_out), out_dtype),
        grid_spec=pltpu.PrefetchScalarGridSpec(
            num_scalar_prefetch=0,
            grid=grid,
            in_specs=[
                pl.BlockSpec((tn_p, p * d_in), lambda i: (i, 0)),  # x tile over batch
                full(w1p), full(b1p),                              # weights/biases
                full(w2p), full(b2p),                              #   resident in VMEM
                full(w3p), full(b3p),
            ],
            out_specs=pl.BlockSpec((tn_p, p * d_out), lambda i: (i, 0)),
        ),
        compiler_params=pltpu.CompilerParams(
            dimension_semantics=("parallel",),   # shard batch tiles across TCs (v7x)
        ),
    )(xp, w1p, b1p, w2p, b2p, w3p, b3p)

    y = yp.reshape(n_rows_pad, d_out)          # free contiguous reshape (unpack)
    if n_rows_pad != N:
        y = y[:N]
    return y


def init_bp_mlp_params(key, input_size, hidden_sizes, output_size):
    """Deterministic init mimicking nn.Linear default: U(-1/sqrt(fan_in), 1/sqrt(fan_in))."""
    sizes = [input_size] + list(hidden_sizes) + [output_size]
    params = {}
    keys = jax.random.split(key, 2 * (len(sizes) - 1))
    for li in range(len(sizes) - 1):
        fan_in, fan_out = sizes[li], sizes[li + 1]
        bound = 1.0 / math.sqrt(fan_in)
        wk, bk = keys[2 * li], keys[2 * li + 1]
        # stored transposed vs PyTorch: (fan_in, fan_out) so kernel does x @ W
        params[f"w{li + 1}"] = jax.random.uniform(
            wk, (fan_in, fan_out), jnp.float32, minval=-bound, maxval=bound
        )
        params[f"b{li + 1}"] = jax.random.uniform(
            bk, (1, fan_out), jnp.float32, minval=-bound, maxval=bound
        )
    return params


def reference_forward(x, params):
    h = jnp.maximum(x @ params["w1"] + params["b1"], 0.0)
    h = jnp.maximum(h @ params["w2"] + params["b2"], 0.0)
    return h @ params["w3"] + params["b3"]


if __name__ == "__main__":
    # Small shapes consistent with the module: MLP over feature vectors.
    batch = 8
    input_size = 32
    hidden_sizes = [64, 32]
    output_size = 16

    key = jax.random.PRNGKey(0)
    k_x, k_p, k_x2 = jax.random.split(key, 3)

    x = jax.random.normal(k_x, (batch, input_size), jnp.float32)
    params = init_bp_mlp_params(k_p, input_size, hidden_sizes, output_size)
    y_ref = reference_forward(x, params)

    # Exact-f32 path (io_dtype=f32) — tight tolerance.
    y32 = jax.block_until_ready(bp_mlp_forward(x, params, io_dtype=jnp.float32))
    assert y32.shape == (batch, output_size)
    assert jnp.allclose(y32, y_ref, atol=1e-4, rtol=1e-4), "f32 path mismatch vs reference"

    # Default bf16-streaming path (bf16 activations + bf16 output) — looser tolerance,
    # since intermediate activations are rounded to bf16 between layers.
    y16 = jax.block_until_ready(bp_mlp_forward(x, params))
    assert y16.shape == (batch, output_size)
    assert jnp.allclose(y16.astype(jnp.float32), y_ref, atol=5e-2, rtol=5e-2), \
        "bf16 path mismatch vs reference"

    # Ragged batch (not a multiple of the pack factor) — exercises pad + slice path.
    xr = jax.random.normal(k_x2, (50, input_size), jnp.float32)
    yr = jax.block_until_ready(bp_mlp_forward(xr, params, io_dtype=jnp.float32))
    assert yr.shape == (50, output_size)
    assert jnp.allclose(yr, reference_forward(xr, params), atol=1e-4, rtol=1e-4), \
        "ragged-batch path mismatch vs reference"

    print("KERNEL_OK")
</pallas_src>

<mosaic_0001>
module attributes {stable_mosaic.version = 11 : i64} {
  func.func @_mlp_kernel(%arg0: i32, %arg1: memref<1x256xf32, #tpu.memory_space<vmem>>, %arg2: memref<256x512xf32, #tpu.memory_space<vmem>>, %arg3: memref<1x512xf32, #tpu.memory_space<vmem>>, %arg4: memref<512x256xf32, #tpu.memory_space<vmem>>, %arg5: memref<1x256xf32, #tpu.memory_space<vmem>>, %arg6: memref<256x128xf32, #tpu.memory_space<vmem>>, %arg7: memref<1x128xf32, #tpu.memory_space<vmem>>, %arg8: memref<1x128xf32, #tpu.memory_space<vmem>>) attributes {dimension_semantics = [#tpu.dimension_semantics<parallel>], iteration_bounds = array<i64: 1>, scalar_prefetch = 0 : i64, scratch_operands = 0 : i64, tpu.core_type = #tpu.core_type<tc>, window_params = [{transform_indices = @transform_0, window_bounds = array<i64: 1, 256>}, {pipeline_mode = #tpu.pipeline_mode<synchronous>, transform_indices = @transform_1, window_bounds = array<i64: 256, 512>}, {pipeline_mode = #tpu.pipeline_mode<synchronous>, transform_indices = @transform_2, window_bounds = array<i64: 1, 512>}, {pipeline_mode = #tpu.pipeline_mode<synchronous>, transform_indices = @transform_3, window_bounds = array<i64: 512, 256>}, {pipeline_mode = #tpu.pipeline_mode<synchronous>, transform_indices = @transform_4, window_bounds = array<i64: 1, 256>}, {pipeline_mode = #tpu.pipeline_mode<synchronous>, transform_indices = @transform_5, window_bounds = array<i64: 256, 128>}, {pipeline_mode = #tpu.pipeline_mode<synchronous>, transform_indices = @transform_6, window_bounds = array<i64: 1, 128>}, {transform_indices = @transform_7, window_bounds = array<i64: 1, 128>}]} {
    %c0 = arith.constant 0 : index
    %c0_0 = arith.constant 0 : index
    %0 = vector.load %arg1[%c0, %c0_0] : memref<1x256xf32, #tpu.memory_space<vmem>>, vector<1x256xf32>
    %c0_1 = arith.constant 0 : index
    %c0_2 = arith.constant 0 : index
    %1 = vector.load %arg2[%c0_1, %c0_2] : memref<256x512xf32, #tpu.memory_space<vmem>>, vector<256x512xf32>
    %cst = arith.constant dense<0.000000e+00> : vector<1x512xf32>
    %2 = tpu.matmul %0, %1, %cst {dimension_numbers = #tpu.dot_dimension_numbers<[1], [0], [0], [1], [0, 0, 1, 1], [], []>} : vector<1x256xf32>, vector<256x512xf32>, vector<1x512xf32> -> vector<1x512xf32>
    %c0_3 = arith.constant 0 : index
    %c0_4 = arith.constant 0 : index
    %3 = vector.load %arg3[%c0_3, %c0_4] : memref<1x512xf32, #tpu.memory_space<vmem>>, vector<1x512xf32>
    %4 = arith.addf %2, %3 : vector<1x512xf32>
    %cst_5 = arith.constant 0.000000e+00 : f32
    %5 = vector.broadcast %cst_5 : f32 to vector<1x512xf32>
    %6 = arith.maximumf %4, %5 : vector<1x512xf32>
    %c0_6 = arith.constant 0 : index
    %c0_7 = arith.constant 0 : index
    %7 = vector.load %arg4[%c0_6, %c0_7] : memref<512x256xf32, #tpu.memory_space<vmem>>, vector<512x256xf32>
    %cst_8 = arith.constant dense<0.000000e+00> : vector<1x256xf32>
    %8 = tpu.matmul %6, %7, %cst_8 {dimension_numbers = #tpu.dot_dimension_numbers<[1], [0], [0], [1], [0, 0, 1, 1], [], []>} : vector<1x512xf32>, vector<512x256xf32>, vector<1x256xf32> -> vector<1x256xf32>
    %c0_9 = arith.constant 0 : index
    %c0_10 = arith.constant 0 : index
    %9 = vector.load %arg5[%c0_9, %c0_10] : memref<1x256xf32, #tpu.memory_space<vmem>>, vector<1x256xf32>
    %10 = arith.addf %8, %9 : vector<1x256xf32>
    %cst_11 = arith.constant 0.000000e+00 : f32
    %11 = vector.broadcast %cst_11 : f32 to vector<1x256xf32>
    %12 = arith.maximumf %10, %11 : vector<1x256xf32>
    %c0_12 = arith.constant 0 : index
    %c0_13 = arith.constant 0 : index
    %13 = vector.load %arg6[%c0_12, %c0_13] : memref<256x128xf32, #tpu.memory_space<vmem>>, vector<256x128xf32>
    %cst_14 = arith.constant dense<0.000000e+00> : vector<1x128xf32>
    %14 = tpu.matmul %12, %13, %cst_14 {dimension_numbers = #tpu.dot_dimension_numbers<[1], [0], [0], [1], [0, 0, 1, 1], [], []>} : vector<1x256xf32>, vector<256x128xf32>, vector<1x128xf32> -> vector<1x128xf32>
    %c0_15 = arith.constant 0 : index
    %c0_16 = arith.constant 0 : index
    %15 = vector.load %arg7[%c0_15, %c0_16] : memref<1x128xf32, #tpu.memory_space<vmem>>, vector<1x128xf32>
    %16 = arith.addf %14, %15 : vector<1x128xf32>
    %c0_17 = arith.constant 0 : index
    %c0_18 = arith.constant 0 : index
    %17 = vector.load %arg8[%c0_17, %c0_18] : memref<1x128xf32, #tpu.memory_space<vmem>>, vector<1x128xf32>
    tpu.vector_store %arg8[%c0_17, %c0_18], %16 {strides = array<i32>} : memref<1x128xf32, #tpu.memory_space<vmem>>, vector<1x128xf32>,
    return
  }
  func.func @transform_0(%arg0: i32) -> (i32, i32) {
    %c0_i32 = arith.constant 0 : i32
    %c0_i32_0 = arith.constant 0 : i32
    return %arg0, %c0_i32 : i32, i32
  }
  func.func @transform_1(%arg0: i32) -> (i32, i32) {
    %c0_i32 = arith.constant 0 : i32
    %c0_i32_0 = arith.constant 0 : i32
    %c0_i32_1 = arith.constant 0 : i32
    return %c0_i32, %c0_i32_0 : i32, i32
  }
  func.func @transform_2(%arg0: i32) -> (i32, i32) {
    %c0_i32 = arith.constant 0 : i32
    %c0_i32_0 = arith.constant 0 : i32
    %c0_i32_1 = arith.constant 0 : i32
    return %c0_i32, %c0_i32_0 : i32, i32
  }
  func.func @transform_3(%arg0: i32) -> (i32, i32) {
    %c0_i32 = arith.constant 0 : i32
    %c0_i32_0 = arith.constant 0 : i32
    %c0_i32_1 = arith.constant 0 : i32
    return %c0_i32, %c0_i32_0 : i32, i32
  }
  func.func @transform_4(%arg0: i32) -> (i32, i32) {
    %c0_i32 = arith.constant 0 : i32
    %c0_i32_0 = arith.constant 0 : i32
    %c0_i32_1 = arith.constant 0 : i32
    return %c0_i32, %c0_i32_0 : i32, i32
  }
  func.func @transform_5(%arg0: i32) -> (i32, i32) {
    %c0_i32 = arith.constant 0 : i32
    %c0_i32_0 = arith.constant 0 : i32
    %c0_i32_1 = arith.constant 0 : i32
    return %c0_i32, %c0_i32_0 : i32, i32
  }
  func.func @transform_6(%arg0: i32) -> (i32, i32) {
    %c0_i32 = arith.constant 0 : i32
    %c0_i32_0 = arith.constant 0 : i32
    %c0_i32_1 = arith.constant 0 : i32
    return %c0_i32, %c0_i32_0 : i32, i32
  }
  func.func @transform_7(%arg0: i32) -> (i32, i32) {
    %c0_i32 = arith.constant 0 : i32
    %c0_i32_0 = arith.constant 0 : i32
    return %arg0, %c0_i32 : i32, i32
  }
}

</mosaic_0001>

<bundles_post_ra>
// kernel: tpu_custom_call.1
= control target key start
LH: loop header
LB: loop body
LE: loop exit
PB: predicated region body
PF: predicated region fallthrough
CT: control target
= control target key end

     0   :  { %12 = vsyncpa [#allocation3], 0  ;;  %s1403_s0 = inlined_call_operand.hbm [shape: f32[1,256], index: 0, kind: input, shape index: {}]   ;;  %s1404_s1 = inlined_call_operand.hbm [shape: f32[256,512], index: 1, kind: input, shape index: {}]   ;;  %s1405_s2 = inlined_call_operand.vmem [shape: f32[1,512], index: 2, kind: input, shape index: {}]   ;;  %s1406_s3 = inlined_call_operand.hbm [shape: f32[512,256], index: 3, kind: input, shape index: {}]   ;;  %s1407_s4 = inlined_call_operand.vmem [shape: f32[1,256], index: 4, kind: input, shape index: {}]   ;;  %s1408_s5 = inlined_call_operand.hbm [shape: f32[256,128], index: 5, kind: input, shape index: {}]   ;;  %s1409_s6 = inlined_call_operand.vmem [shape: f32[1,128], index: 6, kind: input, shape index: {}]   ;;  %s1410_s7 = inlined_call_operand.hbm [shape: f32[1,128], index: 7, kind: output, shape index: {}]  }
   0x1   :  { %13 = vsyncpa [#allocation6], 0 }
   0x2   :  { %14 = vsyncpa [#allocation9], 0 }
   0x3   :  { %15 = vsyncpa [#allocation4], 0  ;;  %s1249_s24 = smov [#allocation5]   ;;  %s1131_s28 = scalar_lea.hbm %s1404_s1, 16384 }
   0x4   :  { %s31_s25 = sshll.u32 %s1249_s24, 4  ;;  %p1132_p0 = scmp.ne.s32.totalorder %s1404_s1, %s1131_s28  ;;  %s32_s25 = int_to_ptr.vmem [resolvable:$true] %s31_s25 }
   0x5   :  { %p1135_p1 = scmp.lt.u32.totalorder %s1131_s28, %s1404_s1 }
   0x7   :  { %p1137_p2 = pnand %p1135_p1, %p1132_p0 }
   0x9   :  { %1140 = shalt.err (!%p1137_p2)
}
   0xa   :  { %s1141_s10 = scalar_lea.vmem %s32_s25, 16384  ;;  %p1146_p4 = scmp.lt.s32.totalorder %s32_s25, %s32_s25 }
   0xb   :  { %p1142_p3 = scmp.ne.s32.totalorder %s32_s25, %s1141_s10  ;;  %p1147_p5 = scmp.lt.s32.totalorder %s1141_s10, %s1141_s10 }
   0xd   :  { %p1148_p6 = por %p1147_p5, %p1146_p4 }
   0xf   :  { %p1149_p7 = pnand %p1148_p6, %p1142_p3 }
  0x11   :  { %1152 = shalt.err (!%p1149_p7)
}
  0x12   :  { %s1250_s11 = smov 512   ;;  %s1251_s12 = smov 32  }
  0x13   :  { %37 = dma.hbm_to_vmem [thread:$0]  %s1404_s1, 16384, %s32_s25, [#allocation6], %s1250_s11, %s1250_s11, %s1251_s12  }
  0x14   :  { %s1252_s15 = smov [#allocation2]   ;;  %s1253_s17 = smov [#allocation7]  }
  0x15   :  { %s22_s16 = sshll.u32 %s1252_s15, 4  ;;  %s45_s18 = sshll.u32 %s1253_s17, 4  ;;  %s23_s16 = int_to_ptr.vmem [resolvable:$true] %s22_s16  ;;  %s46_s18 = int_to_ptr.vmem [resolvable:$true] %s45_s18 }
  0x16   :  { %s1153_s21 = scalar_lea.hbm %s1403_s0, 32 }
  0x17   :  { %p1154_p8 = scmp.ne.s32.totalorder %s1403_s0, %s1153_s21  ;;  %p1157_p9 = scmp.lt.u32.totalorder %s1153_s21, %s1403_s0 }
  0x19   :  { %p1159_p10 = pnand %p1157_p9, %p1154_p8 }
  0x1b   :  { %1162 = shalt.err (!%p1159_p10)
}
  0x1c   :  { %s1163_s1 = scalar_lea.vmem %s23_s16, 32  ;;  %p1168_p12 = scmp.lt.s32.totalorder %s23_s16, %s23_s16 }
  0x1d   :  { %p1164_p11 = scmp.ne.s32.totalorder %s23_s16, %s1163_s1  ;;  %p1169_p13 = scmp.lt.s32.totalorder %s1163_s1, %s1163_s1 }
  0x1f   :  { %p1170_p0 = por %p1169_p13, %p1168_p12 }
  0x21   :  { %p1171_p1 = pnand %p1170_p0, %p1164_p11 }
  0x23   :  { %1174 = shalt.err (!%p1171_p1)
}
  0x24   :  { %25 = dma.hbm_to_vmem [thread:$0]  %s1403_s0, 32, %s23_s16, [#allocation3]  }
  0x25   :  { %s1175_s30 = scalar_lea.hbm %s1406_s3, 16384 }
  0x26   :  { %p1176_p2 = scmp.ne.s32.totalorder %s1406_s3, %s1175_s30  ;;  %p1179_p3 = scmp.lt.u32.totalorder %s1175_s30, %s1406_s3 }
  0x28   :  { %p1181_p4 = pnand %p1179_p3, %p1176_p2 }
  0x2a   :  { %1184 = shalt.err (!%p1181_p4)
}
  0x2b   :  { %s1185_s12 = scalar_lea.vmem %s46_s18, 16384  ;;  %p1190_p6 = scmp.lt.s32.totalorder %s46_s18, %s46_s18 }
  0x2c   :  { %p1186_p5 = scmp.ne.s32.totalorder %s46_s18, %s1185_s12  ;;  %p1191_p7 = scmp.lt.s32.totalorder %s1185_s12, %s1185_s12 }
  0x2e   :  { %p1192_p8 = por %p1191_p7, %p1190_p6 }
  0x30   :  { %p1193_p9 = pnand %p1192_p8, %p1186_p5 }
  0x32   :  { %1196 = shalt.err (!%p1193_p9)
}
  0x33   :  { %s1254_s0 = smov 256   ;;  %s1255_s13 = smov 16  }
  0x34   :  { %51 = dma.hbm_to_vmem [thread:$0]  %s1406_s3, 16384, %s46_s18, [#allocation6], %s1254_s0, %s1254_s0, %s1255_s13  }
  0x35   :  { %s1256_s16 = smov [#allocation8]   ;;  %s1197_s21 = scalar_lea.hbm %s1408_s5, 4096 }
  0x36   :  { %s59_s17 = sshll.u32 %s1256_s16, 4  ;;  %p1198_p10 = scmp.ne.s32.totalorder %s1408_s5, %s1197_s21  ;;  %s60_s17 = int_to_ptr.vmem [resolvable:$true] %s59_s17 }
  0x37   :  { %p1201_p11 = scmp.lt.u32.totalorder %s1197_s21, %s1408_s5 }
  0x39   :  { %p1203_p12 = pnand %p1201_p11, %p1198_p10 }
  0x3b   :  { %1206 = shalt.err (!%p1203_p12)
}
  0x3c   :  { %s1207_s1 = scalar_lea.vmem %s60_s17, 4096  ;;  %p1212_p0 = scmp.lt.s32.totalorder %s60_s17, %s60_s17 }
  0x3d   :  { %p1208_p13 = scmp.ne.s32.totalorder %s60_s17, %s1207_s1  ;;  %p1213_p1 = scmp.lt.s32.totalorder %s1207_s1, %s1207_s1 }
  0x3f   :  { %p1214_p2 = por %p1213_p1, %p1212_p0 }
  0x41   :  { %p1215_p3 = pnand %p1214_p2, %p1208_p13 }
  0x43   :  { %1218 = shalt.err (!%p1215_p3)
}
  0x44   :  { %s1257_s3 = smov 128   ;;  %s1258_s18 = smov 8  }
  0x45   :  { %65 = dma.hbm_to_vmem [thread:$0]  %s1408_s5, 4096, %s60_s17, [#allocation9], %s1257_s3, %s1257_s3, %s1258_s18  }
  0x46   :  { %1241 = dma.done.wait [#allocation3], 32  }
  0x47   :  { %1242 = vsyncadd [#allocation3], 4294967264 }
  0x48   :  { %1243 = dma.done.wait [#allocation6], 32768  }
  0x49   :  { %1244 = vsyncadd [#allocation6], 4294934528 }
  0x4a   :  { %1245 = dma.done.wait [#allocation9], 4096  }
  0x4b   :  { %1246 = vsyncadd [#allocation9], 4294963200  ;;  %v82_v0 = vld [vmem:[#allocation5 + $0x8] sm:$0xff]  ;;  %v81_v2 = vld [vmem:[#allocation5] sm:$0xff]  ;;  %v211_v25 = vlaneseq  ;;  %s1259_s9 = smov [#allocation10]  }
  0x4c   :  { %v86_v1 = vld [vmem:[#allocation5 + $0x28] sm:$0xff]  ;;  %v85_v4 = vld [vmem:[#allocation5 + $0x20] sm:$0xff]  ;;  %v1353_v44 = vld [vmem:[#allocation2] sm:$0x3] }
  0x4d   :  { %v828_v3 = vpack.c.bf16 %v86_v1, %v82_v0  ;;  %v90_v5 = vld [vmem:[#allocation5 + $0x48] sm:$0xff]  ;;  %v830_v7 = vpack.c.bf16 %v85_v4, %v81_v2  ;;  %v89_v9 = vld [vmem:[#allocation5 + $0x40] sm:$0xff]  ;;  %v1348_v32 = vshrl.u32 %v211_v25, 7 }
  0x4e   :  { %v94_v6 = vld [vmem:[#allocation5 + $0x68] sm:$0xff]  ;;  %v93_v10 = vld [vmem:[#allocation5 + $0x60] sm:$0xff] }
  0x4f   :  { %v832_v8 = vpack.c.bf16 %v94_v6, %v90_v5  ;;  %v98_v11 = vld [vmem:[#allocation5 + $0x88] sm:$0xff]  ;;  %829 = vmatprep.subr.bf16.mxu1 %v828_v3  ;;  %v834_v13 = vpack.c.bf16 %v93_v10, %v89_v9  ;;  %v97_v15 = vld [vmem:[#allocation5 + $0x80] sm:$0xff]  ;;  %v1351_v39 = vsub.s32 1, %v1348_v32 }
  0x50   :  { %v102_v12 = vld [vmem:[#allocation5 + $0xa8] sm:$0xff]  ;;  %831 = vmatpush1.bf16.msra.mxu1 %v830_v7  ;;  %v101_v16 = vld [vmem:[#allocation5 + $0xa0] sm:$0xff] }
  0x51   :  { %833 = vmatprep.subr.bf16.mxu1 %v832_v8  ;;  %v836_v14 = vpack.c.bf16 %v102_v12, %v98_v11  ;;  %v106_v17 = vld [vmem:[#allocation5 + $0xc8] sm:$0xff]  ;;  %v838_v19 = vpack.c.bf16 %v101_v16, %v97_v15  ;;  %v105_v21 = vld [vmem:[#allocation5 + $0xc0] sm:$0xff]  ;;  %v1357_v47 = vrot.slane %v1353_v44, %v1351_v39 }
  0x52   :  { %v110_v18 = vld [vmem:[#allocation5 + $0xe8] sm:$0xff]  ;;  %v109_v22 = vld [vmem:[#allocation5 + $0xe0] sm:$0xff] }
  0x53   :  { %v840_v20 = vpack.c.bf16 %v110_v18, %v106_v17  ;;  %v114_v23 = vld [vmem:[#allocation5 + $0x108] sm:$0xff]  ;;  %v842_v26 = vpack.c.bf16 %v109_v22, %v105_v21  ;;  %v113_v28 = vld [vmem:[#allocation5 + $0x100] sm:$0xff]  ;;  %306 = vmatprep.mubr.f32.mxu1 %v1357_v47  ;;  %v391_v17 = vld [vmem:[#allocation7 + $0x18] sm:$0xff] }
  0x54   :  { %835 = vmatpush1.bf16.msra.mxu1 %v834_v13  ;;  %v118_v24 = vld [vmem:[#allocation5 + $0x128] sm:$0xff]  ;;  %v117_v29 = vld [vmem:[#allocation5 + $0x120] sm:$0xff]  ;;  %v390_v21 = vld [vmem:[#allocation7 + $0x10] sm:$0xff] }
  0x55   :  { %837 = vmatprep.subr.bf16.mxu1 %v836_v14  ;;  %v844_v27 = vpack.c.bf16 %v118_v24, %v114_v23  ;;  %v122_v30 = vld [vmem:[#allocation5 + $0x148] sm:$0xff]  ;;  %v846_v33 = vpack.c.bf16 %v117_v29, %v113_v28  ;;  %v121_v35 = vld [vmem:[#allocation5 + $0x140] sm:$0xff]  ;;  %v395_v23 = vld [vmem:[#allocation7 + $0x38] sm:$0xff] }
  0x56   :  { %v126_v31 = vld [vmem:[#allocation5 + $0x168] sm:$0xff]  ;;  %v125_v36 = vld [vmem:[#allocation5 + $0x160] sm:$0xff]  ;;  %v394_v28 = vld [vmem:[#allocation7 + $0x30] sm:$0xff] }
  0x57   :  { %v848_v34 = vpack.c.bf16 %v126_v31, %v122_v30  ;;  %v130_v37 = vld [vmem:[#allocation5 + $0x188] sm:$0xff]  ;;  %v850_v40 = vpack.c.bf16 %v125_v36, %v121_v35  ;;  %v129_v42 = vld [vmem:[#allocation5 + $0x180] sm:$0xff] }
  0x58   :  { %839 = vmatpush1.bf16.msra.mxu1 %v838_v19  ;;  %v134_v38 = vld [vmem:[#allocation5 + $0x1a8] sm:$0xff]  ;;  %v133_v43 = vld [vmem:[#allocation5 + $0x1a0] sm:$0xff] }
  0x59   :  { %841 = vmatprep.subr.bf16.mxu1 %v840_v20  ;;  %v852_v41 = vpack.c.bf16 %v134_v38, %v130_v37  ;;  %v138_v45 = vld [vmem:[#allocation5 + $0x1c8] sm:$0xff]  ;;  %v854_v48 = vpack.c.bf16 %v133_v43, %v129_v42  ;;  %v137_v50 = vld [vmem:[#allocation5 + $0x1c0] sm:$0xff] }
  0x5a   :  { %v142_v46 = vld [vmem:[#allocation5 + $0x1e8] sm:$0xff]  ;;  %v141_v51 = vld [vmem:[#allocation5 + $0x1e0] sm:$0xff] }
  0x5b   :  { %v856_v49 = vpack.c.bf16 %v142_v46, %v138_v45  ;;  %v146_v52 = vld [vmem:[#allocation5 + $0x208] sm:$0xff]  ;;  %v858_v54 = vpack.c.bf16 %v141_v51, %v137_v50  ;;  %v145_v56 = vld [vmem:[#allocation5 + $0x200] sm:$0xff]  ;;  %v403_v45 = vld [vmem:[#allocation7 + $0x78] sm:$0xff] }
  0x5c   :  { %843 = vmatpush1.bf16.msra.mxu1 %v842_v26  ;;  %v150_v53 = vld [vmem:[#allocation5 + $0x228] sm:$0xff]  ;;  %v149_v57 = vld [vmem:[#allocation5 + $0x220] sm:$0xff] }
  0x5d   :  { %845 = vmatprep.subr.bf16.mxu1 %v844_v27  ;;  %v860_v55 = vpack.c.bf16 %v150_v53, %v146_v52  ;;  %v154_v58 = vld [vmem:[#allocation5 + $0x248] sm:$0xff]  ;;  %v862_v60 = vpack.c.bf16 %v149_v57, %v145_v56  ;;  %v153_v62 = vld [vmem:[#allocation5 + $0x240] sm:$0xff] }
  0x5e   :  { %v158_v59 = vld [vmem:[#allocation5 + $0x268] sm:$0xff]  ;;  %v157_v63 = vld [vmem:[#allocation5 + $0x260] sm:$0xff] }
  0x5f   :  { %v864_v61 = vpack.c.bf16 %v158_v59, %v154_v58  ;;  %v162_v0 = vld [vmem:[#allocation5 + $0x288] sm:$0xff]  ;;  %v866_v2 = vpack.c.bf16 %v157_v63, %v153_v62  ;;  %v161_v4 = vld [vmem:[#allocation5 + $0x280] sm:$0xff]  ;;  %v407_v58 = vld [vmem:[#allocation7 + $0x98] sm:$0xff] }
  0x60   :  { %847 = vmatpush1.bf16.msra.mxu1 %v846_v33  ;;  %v166_v1 = vld [vmem:[#allocation5 + $0x2a8] sm:$0xff]  ;;  %v165_v5 = vld [vmem:[#allocation5 + $0x2a0] sm:$0xff]  ;;  %v399_v33 = vld [vmem:[#allocation7 + $0x58] sm:$0xff] }
  0x61   :  { %849 = vmatprep.subr.bf16.mxu1 %v848_v34  ;;  %v868_v3 = vpack.c.bf16 %v166_v1, %v162_v0  ;;  %v170_v6 = vld [vmem:[#allocation5 + $0x2c8] sm:$0xff]  ;;  %v870_v8 = vpack.c.bf16 %v165_v5, %v161_v4  ;;  %v169_v10 = vld [vmem:[#allocation5 + $0x2c0] sm:$0xff] }
  0x62   :  { %v174_v7 = vld [vmem:[#allocation5 + $0x2e8] sm:$0xff]  ;;  %v173_v11 = vld [vmem:[#allocation5 + $0x2e0] sm:$0xff] }
  0x63   :  { %v872_v9 = vpack.c.bf16 %v174_v7, %v170_v6  ;;  %v178_v12 = vld [vmem:[#allocation5 + $0x308] sm:$0xff]  ;;  %v177_v14 = vld [vmem:[#allocation5 + $0x300] sm:$0xff]  ;;  %v874_v19 = vpack.c.bf16 %v173_v11, %v169_v10  ;;  %v411_v6 = vld [vmem:[#allocation7 + $0xb8] sm:$0xff] }
  0x64   :  { %851 = vmatpush1.bf16.msra.mxu1 %v850_v40  ;;  %v182_v13 = vld [vmem:[#allocation5 + $0x328] sm:$0xff]  ;;  %v181_v15 = vld [vmem:[#allocation5 + $0x320] sm:$0xff]  ;;  %v398_v40 = vld [vmem:[#allocation7 + $0x50] sm:$0xff] }
  0x65   :  { %853 = vmatprep.subr.bf16.mxu1 %v852_v41  ;;  %v389_v16 = vld [vmem:[#allocation7 + $0x8] sm:$0xff]  ;;  %v388_v18 = vld [vmem:[#allocation7] sm:$0xff]  ;;  %v876_v24 = vpack.c.bf16 %v182_v13, %v178_v12  ;;  %v878_v35 = vpack.c.bf16 %v181_v15, %v177_v14  ;;  %v84_v7 = vld [vmem:[#allocation5 + $0x18] sm:$0xff] }
  0x66   :  { %v956_v20 = vpack.c.bf16 %v391_v17, %v389_v16  ;;  %v393_v22 = vld [vmem:[#allocation7 + $0x28] sm:$0xff]  ;;  %v958_v25 = vpack.c.bf16 %v390_v21, %v388_v18  ;;  %v392_v27 = vld [vmem:[#allocation7 + $0x20] sm:$0xff]  ;;  %v410_v14 = vld [vmem:[#allocation7 + $0xb0] sm:$0xff] }
  0x67   :  { %v960_v26 = vpack.c.bf16 %v395_v23, %v393_v22  ;;  %v397_v29 = vld [vmem:[#allocation7 + $0x48] sm:$0xff]  ;;  %v962_v34 = vpack.c.bf16 %v394_v28, %v392_v27  ;;  %v185_v36 = vld [vmem:[#allocation5 + $0x340] sm:$0xff]  ;;  %v83_v16 = vld [vmem:[#allocation5 + $0x10] sm:$0xff] }
  0x68   :  { %855 = vmatpush1.bf16.msra.mxu1 %v854_v48  ;;  %v186_v30 = vld [vmem:[#allocation5 + $0x348] sm:$0xff]  ;;  %957 = vmatprep.subr.bf16.mxu0 %v956_v20  ;;  %v964_v37 = vpack.c.bf16 %v399_v33, %v397_v29  ;;  %v396_v38 = vld [vmem:[#allocation7 + $0x40] sm:$0xff]  ;;  %v87_v17 = vld [vmem:[#allocation5 + $0x30] sm:$0xff] }
  0x69   :  { %857 = vmatprep.subr.bf16.mxu1 %v856_v49  ;;  %v190_v31 = vld [vmem:[#allocation5 + $0x368] sm:$0xff]  ;;  %959 = vmatpush1.bf16.msra.mxu0 %v958_v25  ;;  %v189_v42 = vld [vmem:[#allocation5 + $0x360] sm:$0xff]  ;;  %v966_v49 = vpack.c.bf16 %v398_v40, %v396_v38  ;;  %v92_v18 = vld [vmem:[#allocation5 + $0x58] sm:$0xff] }
  0x6a   :  { %961 = vmatprep.subr.bf16.mxu0 %v960_v26  ;;  %v880_v41 = vpack.c.bf16 %v190_v31, %v186_v30  ;;  %v401_v43 = vld [vmem:[#allocation7 + $0x68] sm:$0xff]  ;;  %v882_v50 = vpack.c.bf16 %v189_v42, %v185_v36  ;;  %v193_v51 = vld [vmem:[#allocation5 + $0x380] sm:$0xff]  ;;  %v415_v21 = vld [vmem:[#allocation7 + $0xd8] sm:$0xff] }
  0x6b   :  { %v194_v46 = vld [vmem:[#allocation5 + $0x388] sm:$0xff]  ;;  %v968_v52 = vpack.c.bf16 %v403_v45, %v401_v43  ;;  %v400_v53 = vld [vmem:[#allocation7 + $0x60] sm:$0xff]  ;;  %v91_v25 = vld [vmem:[#allocation5 + $0x50] sm:$0xff] }
  0x6c   :  { %859 = vmatpush1.bf16.msra.mxu1 %v858_v54  ;;  %v198_v48 = vld [vmem:[#allocation5 + $0x3a8] sm:$0xff]  ;;  %v402_v54 = vld [vmem:[#allocation7 + $0x70] sm:$0xff]  ;;  %v197_v56 = vld [vmem:[#allocation5 + $0x3a0] sm:$0xff] }
  0x6d   :  { %861 = vmatprep.subr.bf16.mxu1 %v860_v55  ;;  %963 = vmatpush1.bf16.msra.mxu0 %v962_v34  ;;  %v884_v55 = vpack.c.bf16 %v198_v48, %v194_v46  ;;  %v405_v57 = vld [vmem:[#allocation7 + $0x88] sm:$0xff]  ;;  %v886_v62 = vpack.c.bf16 %v197_v56, %v193_v51  ;;  %v201_v63 = vld [vmem:[#allocation5 + $0x3c0] sm:$0xff]  ;;  %v414_v27 = vld [vmem:[#allocation7 + $0xd0] sm:$0xff] }
  0x6e   :  { %965 = vmatprep.subr.bf16.mxu0 %v964_v37  ;;  %v202_v59 = vld [vmem:[#allocation5 + $0x3c8] sm:$0xff]  ;;  %v972_v0 = vpack.c.bf16 %v407_v58, %v405_v57  ;;  %v404_v1 = vld [vmem:[#allocation7 + $0x80] sm:$0xff]  ;;  %v95_v29 = vld [vmem:[#allocation5 + $0x70] sm:$0xff] }
  0x6f   :  { %v205_v4 = vld [vmem:[#allocation5 + $0x3e0] sm:$0xff]  ;;  %v409_v5 = vld [vmem:[#allocation7 + $0xa8] sm:$0xff]  ;;  %v419_v33 = vld [vmem:[#allocation7 + $0xf8] sm:$0xff]  ;;  %v898_v36 = vpack.c.bf16 %v95_v29, %v91_v25 }
  0x70   :  { %863 = vmatpush1.bf16.msra.mxu1 %v862_v60  ;;  %v206_v60 = vld [vmem:[#allocation5 + $0x3e8] sm:$0xff]  ;;  %v890_v11 = vpack.c.bf16 %v205_v4, %v201_v63  ;;  %v976_v12 = vpack.c.bf16 %v411_v6, %v409_v5  ;;  %v408_v13 = vld [vmem:[#allocation7 + $0xa0] sm:$0xff]  ;;  %v100_v34 = vld [vmem:[#allocation5 + $0x98] sm:$0xff] }
  0x71   :  { %865 = vmatprep.subr.bf16.mxu1 %v864_v61  ;;  %967 = vmatpush1.bf16.msra.mxu0 %v966_v49  ;;  %v970_v61 = vpack.c.bf16 %v402_v54, %v400_v53  ;;  %v413_v20 = vld [vmem:[#allocation7 + $0xc8] sm:$0xff]  ;;  %v978_v23 = vpack.c.bf16 %v410_v14, %v408_v13  ;;  %v412_v26 = vld [vmem:[#allocation7 + $0xc0] sm:$0xff]  ;;  %v99_v37 = vld [vmem:[#allocation5 + $0x90] sm:$0xff] }
  0x72   :  { %969 = vmatprep.subr.bf16.mxu0 %v968_v52  ;;  %v980_v30 = vpack.c.bf16 %v415_v21, %v413_v20  ;;  %v417_v31 = vld [vmem:[#allocation7 + $0xe8] sm:$0xff]  ;;  %v416_v40 = vld [vmem:[#allocation7 + $0xe0] sm:$0xff]  ;;  %v103_v43 = vld [vmem:[#allocation5 + $0xb0] sm:$0xff] }
  0x73   :  { %v984_v38 = vpack.c.bf16 %v419_v33, %v417_v31  ;;  %v421_v45 = vld [vmem:[#allocation7 + $0x108] sm:$0xff]  ;;  %v423_v46 = vld [vmem:[#allocation7 + $0x118] sm:$0xff]  ;;  %v902_v51 = vpack.c.bf16 %v103_v43, %v99_v37  ;;  %v107_v52 = vld [vmem:[#allocation5 + $0xd0] sm:$0xff] }
  0x74   :  { %867 = vmatpush1.bf16.msra.mxu1 %v866_v2  ;;  %v406_v2 = vld [vmem:[#allocation7 + $0x90] sm:$0xff]  ;;  %v108_v48 = vld [vmem:[#allocation5 + $0xd8] sm:$0xff]  ;;  %v988_v53 = vpack.c.bf16 %v423_v46, %v421_v45  ;;  %v420_v54 = vld [vmem:[#allocation7 + $0x100] sm:$0xff] }
  0x75   :  { %869 = vmatprep.subr.bf16.mxu1 %v868_v3  ;;  %v888_v3 = vpack.c.bf16 %v206_v60, %v202_v59  ;;  %971 = vmatpush1.bf16.msra.mxu0 %v970_v61  ;;  %v974_v10 = vpack.c.bf16 %v406_v2, %v404_v1  ;;  %v112_v49 = vld [vmem:[#allocation5 + $0xf8] sm:$0xff]  ;;  %v111_v56 = vld [vmem:[#allocation5 + $0xf0] sm:$0xff]  ;;  %v425_v57 = vld [vmem:[#allocation7 + $0x128] sm:$0xff] }
  0x76   :  { %973 = vmatprep.subr.bf16.mxu0 %v972_v0  ;;  %v427_v58 = vld [vmem:[#allocation7 + $0x138] sm:$0xff]  ;;  %v115_v63 = vld [vmem:[#allocation5 + $0x110] sm:$0xff]  ;;  %v424_v1 = vld [vmem:[#allocation7 + $0x120] sm:$0xff] }
  0x77   :  { %v116_v59 = vld [vmem:[#allocation5 + $0x118] sm:$0xff]  ;;  %v992_v0 = vpack.c.bf16 %v427_v58, %v425_v57  ;;  %v426_v2 = vld [vmem:[#allocation7 + $0x130] sm:$0xff]  ;;  %v429_v5 = vld [vmem:[#allocation7 + $0x148] sm:$0xff] }
  0x78   :  { %871 = vmatpush1.bf16.msra.mxu1 %v870_v8  ;;  %v88_v8 = vld [vmem:[#allocation5 + $0x38] sm:$0xff]  ;;  %v119_v4 = vld [vmem:[#allocation5 + $0x130] sm:$0xff]  ;;  %v428_v14 = vld [vmem:[#allocation7 + $0x140] sm:$0xff] }
  0x79   :  { %873 = vmatprep.subr.bf16.mxu1 %v872_v9  ;;  %v1361_v9 = vsub.s32 0, %v1348_v32  ;;  %v892_v15 = vpack.c.bf16 %v88_v8, %v84_v7  ;;  %975 = vmatpush1.bf16.msra.mxu0 %v974_v10  ;;  %v120_v60 = vld [vmem:[#allocation5 + $0x138] sm:$0xff]  ;;  %v994_v10 = vpack.c.bf16 %v426_v2, %v424_v1  ;;  %v131_v25 = vld [vmem:[#allocation5 + $0x190] sm:$0xff]  ;;  %v437_v31 = vld [vmem:[#allocation7 + $0x188] sm:$0xff] }
  0x7a   :  { %977 = vmatprep.subr.bf16.mxu0 %v976_v12  ;;  %v431_v6 = vld [vmem:[#allocation7 + $0x158] sm:$0xff]  ;;  %v123_v12 = vld [vmem:[#allocation5 + $0x150] sm:$0xff]  ;;  %v441_v45 = vld [vmem:[#allocation7 + $0x1a8] sm:$0xff] }
  0x7b   :  { %v1365_v22 = vrot.slane %v1353_v44, %v1361_v9  ;;  %v982_v44 = vpack.c.bf16 %v414_v27, %v412_v26  ;;  %v124_v7 = vld [vmem:[#allocation5 + $0x158] sm:$0xff]  ;;  %v996_v13 = vpack.c.bf16 %v431_v6, %v429_v5  ;;  %v432_v27 = vld [vmem:[#allocation7 + $0x160] sm:$0xff]  ;;  %v139_v37 = vld [vmem:[#allocation5 + $0x1d0] sm:$0xff] }
  0x7c   :  { %875 = vmatpush1.bf16.msra.mxu1 %v874_v19  ;;  %v96_v19 = vld [vmem:[#allocation5 + $0x78] sm:$0xff]  ;;  %v143_v43 = vld [vmem:[#allocation5 + $0x1f0] sm:$0xff]  ;;  %v445_v57 = vld [vmem:[#allocation7 + $0x1c8] sm:$0xff] }
  0x7d   :  { %877 = vmatprep.subr.bf16.mxu1 %v876_v24  ;;  %v894_v24 = vpack.c.bf16 %v87_v17, %v83_v16  ;;  %v896_v28 = vpack.c.bf16 %v96_v19, %v92_v18  ;;  %979 = vmatpush1.bf16.msra.mxu0 %v978_v23  ;;  %v128_v8 = vld [vmem:[#allocation5 + $0x178] sm:$0xff]  ;;  %v127_v17 = vld [vmem:[#allocation5 + $0x170] sm:$0xff]  ;;  %v433_v18 = vld [vmem:[#allocation7 + $0x168] sm:$0xff] }
  0x7e   :  { %981 = vmatprep.subr.bf16.mxu0 %v980_v30  ;;  %v912_v16 = vpack.c.bf16 %v128_v8, %v124_v7  ;;  %v435_v19 = vld [vmem:[#allocation7 + $0x178] sm:$0xff]  ;;  %v135_v30 = vld [vmem:[#allocation5 + $0x1b0] sm:$0xff] }
  0x7f   :  { %v132_v20 = vld [vmem:[#allocation5 + $0x198] sm:$0xff]  ;;  %v1000_v26 = vpack.c.bf16 %v435_v19, %v433_v18  ;;  %v155_v1 = vld [vmem:[#allocation5 + $0x250] sm:$0xff] }
  0x80   :  { %879 = vmatpush1.bf16.msra.mxu1 %v878_v35  ;;  %v104_v35 = vld [vmem:[#allocation5 + $0xb8] sm:$0xff]  ;;  %v159_v2 = vld [vmem:[#allocation5 + $0x270] sm:$0xff] }
  0x81   :  { %881 = vmatprep.subr.bf16.mxu1 %v880_v41  ;;  %v418_v41 = vld [vmem:[#allocation7 + $0xf0] sm:$0xff]  ;;  %v900_v42 = vpack.c.bf16 %v104_v35, %v100_v34  ;;  %983 = vmatpush1.bf16.msra.mxu0 %v982_v44  ;;  %v136_v21 = vld [vmem:[#allocation5 + $0x1b8] sm:$0xff]  ;;  %v930_v5 = vpack.c.bf16 %v159_v2, %v155_v1  ;;  %v692_v2 = vld [vmem:[#allocation8 + $0xa0] sm:$0xff] }
  0x82   :  { %985 = vmatprep.subr.bf16.mxu0 %v984_v38  ;;  %v916_v29 = vpack.c.bf16 %v136_v21, %v132_v20  ;;  %v439_v33 = vld [vmem:[#allocation7 + $0x198] sm:$0xff]  ;;  %v163_v7 = vld [vmem:[#allocation5 + $0x290] sm:$0xff] }
  0x83   :  { %v140_v34 = vld [vmem:[#allocation5 + $0x1d8] sm:$0xff]  ;;  %v1004_v38 = vpack.c.bf16 %v439_v33, %v437_v31  ;;  %v167_v8 = vld [vmem:[#allocation5 + $0x2b0] sm:$0xff] }
  0x84   :  { %883 = vmatpush1.bf16.msra.mxu1 %v882_v50  ;;  %v986_v50 = vpack.c.bf16 %v418_v41, %v416_v40  ;;  %v144_v35 = vld [vmem:[#allocation5 + $0x1f8] sm:$0xff]  ;;  %v436_v40 = vld [vmem:[#allocation7 + $0x180] sm:$0xff]  ;;  %v438_v41 = vld [vmem:[#allocation7 + $0x190] sm:$0xff] }
  0x85   :  { %885 = vmatprep.subr.bf16.mxu1 %v884_v55  ;;  %v904_v55 = vpack.c.bf16 %v112_v49, %v108_v48  ;;  %v443_v46 = vld [vmem:[#allocation7 + $0x1b8] sm:$0xff]  ;;  %v179_v20 = vld [vmem:[#allocation5 + $0x310] sm:$0xff] }
  0x86   :  { %987 = vmatpush1.bf16.msra.mxu0 %v986_v50  ;;  %v148_v48 = vld [vmem:[#allocation5 + $0x218] sm:$0xff]  ;;  %v1006_v50 = vpack.c.bf16 %v438_v41, %v436_v40  ;;  %v183_v21 = vld [vmem:[#allocation5 + $0x330] sm:$0xff] }
  0x87   :  { %989 = vmatprep.subr.bf16.mxu0 %v988_v53  ;;  %v152_v49 = vld [vmem:[#allocation5 + $0x238] sm:$0xff]  ;;  %v1008_v53 = vpack.c.bf16 %v443_v46, %v441_v45  ;;  %v203_v40 = vld [vmem:[#allocation5 + $0x3d0] sm:$0xff] }
  0x88   :  { %887 = vmatpush1.bf16.msra.mxu1 %v886_v62  ;;  %v906_v62 = vpack.c.bf16 %v111_v56, %v107_v52  ;;  %v147_v52 = vld [vmem:[#allocation5 + $0x210] sm:$0xff]  ;;  %v447_v58 = vld [vmem:[#allocation7 + $0x1d8] sm:$0xff] }
  0x89   :  { %889 = vmatprep.subr.bf16.mxu1 %v888_v3  ;;  %v908_v3 = vpack.c.bf16 %v120_v60, %v116_v59  ;;  %v151_v56 = vld [vmem:[#allocation5 + $0x230] sm:$0xff]  ;;  %v156_v59 = vld [vmem:[#allocation5 + $0x258] sm:$0xff] }
  0x8a   :  { %v160_v60 = vld [vmem:[#allocation5 + $0x278] sm:$0xff]  ;;  %v207_v41 = vld [vmem:[#allocation5 + $0x3f0] sm:$0xff] }
  0x8b   :  { %v446_v45 = vld [vmem:[#allocation7 + $0x1d0] sm:$0xff]  ;;  %v675_v1 = vld [vmem:[#allocation8 + $0x18] sm:$0xff] }
  0x8c   :  { %891 = vmatpush1.bf16.msra.mxu1 %v890_v11  ;;  %v910_v11 = vpack.c.bf16 %v119_v4, %v115_v63  ;;  %v1012_v63 = vpack.c.bf16 %v447_v58, %v445_v57  ;;  %v168_v4 = vld [vmem:[#allocation5 + $0x2b8] sm:$0xff]  ;;  %v689_v57 = vld [vmem:[#allocation8 + $0x88] sm:$0xff]  ;;  %v672_v58 = vld [vmem:[#allocation8] sm:$0xff] }
  0x8d   :  { %893 = vmatprep.subr.bf16.mxu1 %v892_v15  ;;  %v430_v15 = vld [vmem:[#allocation7 + $0x150] sm:$0xff] }
  0x8e   :  { %v998_v23 = vpack.c.bf16 %v430_v15, %v428_v14  ;;  %v171_v14 = vld [vmem:[#allocation5 + $0x2d0] sm:$0xff] }
  0x8f   :  { %307 = vmatmul.mubr.f32.vlgmr.msra.gmra.mrb[0].mxu1 %v1365_v22  ;;  %v175_v15 = vld [vmem:[#allocation5 + $0x2f0] sm:$0xff] }
  0x90   :  { %895 = vmatpush1.bf16.msra.mxu1 %v894_v24  ;;  %377 = vmatprep.mubr.f32.mxu1 %v1357_v47  ;;  %v422_v47 = vld [vmem:[#allocation7 + $0x110] sm:$0xff]  ;;  %v914_v24 = vpack.c.bf16 %v127_v17, %v123_v12  ;;  %v934_v12 = vpack.c.bf16 %v167_v8, %v163_v7  ;;  %v184_v17 = vld [vmem:[#allocation5 + $0x338] sm:$0xff]  ;;  %v938_v18 = vpack.c.bf16 %v175_v15, %v171_v14  ;;  %v677_v7 = vld [vmem:[#allocation8 + $0x28] sm:$0xff] }
  0x91   :  { %897 = vmatprep.subr.bf16.mxu1 %v896_v28  ;;  %v990_v61 = vpack.c.bf16 %v422_v47, %v420_v54  ;;  %v434_v28 = vld [vmem:[#allocation7 + $0x170] sm:$0xff]  ;;  %v440_v54 = vld [vmem:[#allocation7 + $0x1a0] sm:$0xff]  ;;  %v679_v14 = vld [vmem:[#allocation8 + $0x38] sm:$0xff] }
  0x92   :  { %v1002_v44 = vpack.c.bf16 %v434_v28, %v432_v27  ;;  %v442_v47 = vld [vmem:[#allocation7 + $0x1b0] sm:$0xff]  ;;  %v696_v15 = vld [vmem:[#allocation8 + $0xc0] sm:$0xff] }
  0x93   :  { %991 = vmatpush1.bf16.msra.mxu0 %v990_v61  ;;  %v1010_v61 = vpack.c.bf16 %v442_v47, %v440_v54  ;;  %v187_v27 = vld [vmem:[#allocation5 + $0x350] sm:$0xff]  ;;  %v453_v54 = vld [vmem:[#allocation7 + $0x208] sm:$0xff]  ;;  %v455_v47 = vld [vmem:[#allocation7 + $0x218] sm:$0xff] }
  0x94   :  { %899 = vmatpush1.bf16.msra.mxu1 %v898_v36  ;;  %993 = vmatprep.subr.bf16.mxu0 %v992_v0  ;;  %v918_v36 = vpack.c.bf16 %v135_v30, %v131_v25  ;;  %v928_v0 = vpack.c.bf16 %v160_v60, %v156_v59  ;;  %v942_v25 = vpack.c.bf16 %v183_v21, %v179_v20  ;;  %v191_v28 = vld [vmem:[#allocation5 + $0x370] sm:$0xff]  ;;  %v200_v30 = vld [vmem:[#allocation5 + $0x3b8] sm:$0xff]  ;;  %v673_v59 = vld [vmem:[#allocation8 + $0x8] sm:$0xff] }
  0x95   :  { %901 = vmatprep.subr.bf16.mxu1 %v900_v42  ;;  %v920_v42 = vpack.c.bf16 %v144_v35, %v140_v34  ;;  %v946_v31 = vpack.c.bf16 %v191_v28, %v187_v27  ;;  %v195_v34 = vld [vmem:[#allocation5 + $0x390] sm:$0xff]  ;;  %v681_v20 = vld [vmem:[#allocation8 + $0x48] sm:$0xff]  ;;  %v683_v27 = vld [vmem:[#allocation8 + $0x58] sm:$0xff] }
  0x96   :  { %v199_v35 = vld [vmem:[#allocation5 + $0x3b0] sm:$0xff]  ;;  %v700_v28 = vld [vmem:[#allocation8 + $0xe0] sm:$0xff] }
  0x97   :  { %995 = vmatpush1.bf16.msra.mxu0 %v994_v10  ;;  %v172_v10 = vld [vmem:[#allocation5 + $0x2d8] sm:$0xff]  ;;  %v690_v60 = vld [vmem:[#allocation8 + $0x90] sm:$0xff] }
  0x98   :  { %903 = vmatpush1.bf16.msra.mxu1 %v902_v51  ;;  %997 = vmatprep.subr.bf16.mxu0 %v996_v13  ;;  %v922_v51 = vpack.c.bf16 %v143_v43, %v139_v37  ;;  %v950_v37 = vpack.c.bf16 %v199_v35, %v195_v34  ;;  %v444_v43 = vld [vmem:[#allocation7 + $0x1c0] sm:$0xff]  ;;  %v694_v8 = vld [vmem:[#allocation8 + $0xb0] sm:$0xff] }
  0x99   :  { %905 = vmatprep.subr.bf16.mxu1 %v904_v55  ;;  %v924_v55 = vpack.c.bf16 %v152_v49, %v148_v48  ;;  %v1014_v46 = vpack.c.bf16 %v446_v45, %v444_v43  ;;  %v449_v48 = vld [vmem:[#allocation7 + $0x1e8] sm:$0xff]  ;;  %v451_v49 = vld [vmem:[#allocation7 + $0x1f8] sm:$0xff]  ;;  %v698_v21 = vld [vmem:[#allocation8 + $0xd0] sm:$0xff] }
  0x9a   :  { %v459_v43 = vld [vmem:[#allocation7 + $0x238] sm:$0xff] }
  0x9b   :  { %999 = vmatpush1.bf16.msra.mxu0 %v998_v23  ;;  %v188_v23 = vld [vmem:[#allocation5 + $0x358] sm:$0xff] }
  0x9c   :  { %907 = vmatpush1.bf16.msra.mxu1 %v906_v62  ;;  %1001 = vmatprep.subr.bf16.mxu0 %v1000_v26  ;;  %v926_v62 = vpack.c.bf16 %v151_v56, %v147_v52  ;;  %v450_v52 = vld [vmem:[#allocation7 + $0x1f0] sm:$0xff]  ;;  %v688_v56 = vld [vmem:[#allocation8 + $0x80] sm:$0xff] }
  0x9d   :  { %909 = vmatprep.subr.bf16.mxu1 %v908_v3  ;;  %v164_v3 = vld [vmem:[#allocation5 + $0x298] sm:$0xff] }
  0x9e   :  { %v932_v6 = vpack.c.bf16 %v168_v4, %v164_v3  ;;  %v693_v3 = vld [vmem:[#allocation8 + $0xa8] sm:$0xff] }
  0x9f   :  { %1003 = vmatpush1.bf16.msra.mxu0 %v1002_v44  ;;  %v204_v44 = vld [vmem:[#allocation5 + $0x3d8] sm:$0xff] }
  0xa0   :  { %911 = vmatpush1.bf16.msra.mxu1 %v910_v11  ;;  %1005 = vmatprep.subr.bf16.mxu0 %v1004_v38  ;;  %v176_v11 = vld [vmem:[#allocation5 + $0x2f8] sm:$0xff] }
  0xa1   :  { %913 = vmatprep.subr.bf16.mxu1 %v912_v16  ;;  %v936_v13 = vpack.c.bf16 %v176_v11, %v172_v10  ;;  %v180_v16 = vld [vmem:[#allocation5 + $0x318] sm:$0xff] }
  0xa2   :  { %v940_v19 = vpack.c.bf16 %v184_v17, %v180_v16  ;;  %v695_v10 = vld [vmem:[#allocation8 + $0xb8] sm:$0xff]  ;;  %v697_v16 = vld [vmem:[#allocation8 + $0xc8] sm:$0xff] }
  0xa3   :  { %1007 = vmatpush1.bf16.msra.mxu0 %v1006_v50  ;;  %v1016_v50 = vpack.c.bf16 %v451_v49, %v449_v48 }
  0xa4   :  { %915 = vmatpush1.bf16.msra.mxu1 %v914_v24  ;;  %1009 = vmatprep.subr.bf16.mxu0 %v1008_v53  ;;  %v192_v24 = vld [vmem:[#allocation5 + $0x378] sm:$0xff] }
  0xa5   :  { %917 = vmatprep.subr.bf16.mxu1 %v916_v29  ;;  %v944_v26 = vpack.c.bf16 %v192_v24, %v188_v23  ;;  %v196_v29 = vld [vmem:[#allocation5 + $0x398] sm:$0xff] }
  0xa6   :  { %v948_v33 = vpack.c.bf16 %v200_v30, %v196_v29  ;;  %v699_v23 = vld [vmem:[#allocation8 + $0xd8] sm:$0xff]  ;;  %v701_v29 = vld [vmem:[#allocation8 + $0xe8] sm:$0xff] }
  0xa7   :  { %1011 = vmatpush1.bf16.msra.mxu0 %v1010_v61  ;;  %v691_v61 = vld [vmem:[#allocation8 + $0x98] sm:$0xff] }
  0xa8   :  { %919 = vmatpush1.bf16.msra.mxu1 %v918_v36  ;;  %1013 = vmatprep.subr.bf16.mxu0 %v1012_v63  ;;  %v208_v36 = vld [vmem:[#allocation5 + $0x3f8] sm:$0xff]  ;;  %v1088_v63 = vpack.c.bf16 %v691_v61, %v690_v60  ;;  %v464_v60 = vld [vmem:[#allocation7 + $0x260] sm:$0xff]  ;;  %v466_v61 = vld [vmem:[#allocation7 + $0x270] sm:$0xff] }
  0xa9   :  { %921 = vmatprep.subr.bf16.mxu1 %v920_v42  ;;  %v952_v38 = vpack.c.bf16 %v208_v36, %v204_v44  ;;  %v954_v42 = vpack.c.bf16 %v207_v41, %v203_v40  ;;  %v454_v40 = vld [vmem:[#allocation7 + $0x210] sm:$0xff] }
  0xab   :  { %1015 = vmatpush1.bf16.msra.mxu0 %v1014_v46 }
  0xac   :  { %923 = vmatpush1.bf16.msra.mxu1 %v922_v51  ;;  %v448_v51 = vld [vmem:[#allocation7 + $0x1e0] sm:$0xff]  ;;  %1017 = vmatprep.subr.bf16.mxu0 %v1016_v50 }
  0xad   :  { %925 = vmatprep.subr.bf16.mxu1 %v924_v55  ;;  %v1018_v53 = vpack.c.bf16 %v450_v52, %v448_v51  ;;  %v1020_v55 = vpack.c.bf16 %v455_v47, %v453_v54  ;;  %v456_v50 = vld [vmem:[#allocation7 + $0x220] sm:$0xff]  ;;  %v458_v51 = vld [vmem:[#allocation7 + $0x230] sm:$0xff]  ;;  %v461_v52 = vld [vmem:[#allocation7 + $0x248] sm:$0xff] }
  0xae   :  { %v1026_v54 = vpack.c.bf16 %v458_v51, %v456_v50  ;;  %v496_v50 = vld [vmem:[#allocation7 + $0x360] sm:$0xff]  ;;  %v498_v51 = vld [vmem:[#allocation7 + $0x370] sm:$0xff] }
  0xaf   :  { %1019 = vmatpush1.bf16.msra.mxu0 %v1018_v53  ;;  %v463_v53 = vld [vmem:[#allocation7 + $0x258] sm:$0xff] }
  0xb0   :  { %927 = vmatpush1.bf16.msra.mxu1 %v926_v62  ;;  %1021 = vmatprep.subr.bf16.mxu0 %v1020_v55  ;;  %v1086_v62 = vpack.c.bf16 %v673_v59, %v672_v58  ;;  %v1028_v47 = vpack.c.bf16 %v463_v53, %v461_v52  ;;  %v460_v55 = vld [vmem:[#allocation7 + $0x240] sm:$0xff]  ;;  %v467_v58 = vld [vmem:[#allocation7 + $0x278] sm:$0xff]  ;;  %v501_v52 = vld [vmem:[#allocation7 + $0x388] sm:$0xff] }
  0xb1   :  { %929 = vmatprep.subr.bf16.mxu1 %v928_v0  ;;  %v674_v0 = vld [vmem:[#allocation8 + $0x10] sm:$0xff]  ;;  %v503_v53 = vld [vmem:[#allocation7 + $0x398] sm:$0xff] }
  0xb2   :  { %v1090_v4 = vpack.c.bf16 %v675_v1, %v674_v0  ;;  %v1034_v0 = vpack.c.bf16 %v466_v61, %v464_v60  ;;  %v504_v60 = vld [vmem:[#allocation7 + $0x3a0] sm:$0xff]  ;;  %v506_v61 = vld [vmem:[#allocation7 + $0x3b0] sm:$0xff] }
  0xb4   :  { %931 = vmatpush1.bf16.msra.mxu1 %v930_v5  ;;  %v1092_v5 = vpack.c.bf16 %v693_v3, %v692_v2  ;;  %v468_v2 = vld [vmem:[#allocation7 + $0x280] sm:$0xff]  ;;  %v470_v3 = vld [vmem:[#allocation7 + $0x290] sm:$0xff] }
  0xb5   :  { %933 = vmatprep.subr.bf16.mxu1 %v932_v6  ;;  %v676_v6 = vld [vmem:[#allocation8 + $0x20] sm:$0xff] }
  0xb6   :  { %v1094_v11 = vpack.c.bf16 %v677_v7, %v676_v6  ;;  %v1038_v6 = vpack.c.bf16 %v470_v3, %v468_v2  ;;  %v232_v2 = vsub.s32 2, %v1348_v32  ;;  %v508_v3 = vld [vmem:[#allocation7 + $0x3c0] sm:$0xff] }
  0xb8   :  { %935 = vmatpush1.bf16.msra.mxu1 %v934_v12  ;;  %v1096_v12 = vpack.c.bf16 %v695_v10, %v694_v8  ;;  %v472_v8 = vld [vmem:[#allocation7 + $0x2a0] sm:$0xff]  ;;  %v474_v10 = vld [vmem:[#allocation7 + $0x2b0] sm:$0xff] }
  0xb9   :  { %937 = vmatprep.subr.bf16.mxu1 %v936_v13  ;;  %v678_v13 = vld [vmem:[#allocation8 + $0x30] sm:$0xff] }
  0xba   :  { %v1098_v17 = vpack.c.bf16 %v679_v14, %v678_v13  ;;  %v1042_v13 = vpack.c.bf16 %v474_v10, %v472_v8 }
  0xbc   :  { %939 = vmatpush1.bf16.msra.mxu1 %v938_v18  ;;  %v1100_v18 = vpack.c.bf16 %v697_v16, %v696_v15  ;;  %v476_v15 = vld [vmem:[#allocation7 + $0x2c0] sm:$0xff]  ;;  %v478_v16 = vld [vmem:[#allocation7 + $0x2d0] sm:$0xff] }
  0xbd   :  { %941 = vmatprep.subr.bf16.mxu1 %v940_v19  ;;  %v680_v19 = vld [vmem:[#allocation8 + $0x40] sm:$0xff] }
  0xbe   :  { %v1102_v24 = vpack.c.bf16 %v681_v20, %v680_v19  ;;  %v1046_v19 = vpack.c.bf16 %v478_v16, %v476_v15 }
  0xc0   :  { %943 = vmatpush1.bf16.msra.mxu1 %v942_v25  ;;  %v1104_v25 = vpack.c.bf16 %v699_v23, %v698_v21  ;;  %v480_v21 = vld [vmem:[#allocation7 + $0x2e0] sm:$0xff]  ;;  %v482_v23 = vld [vmem:[#allocation7 + $0x2f0] sm:$0xff] }
  0xc1   :  { %945 = vmatprep.subr.bf16.mxu1 %v944_v26  ;;  %v682_v26 = vld [vmem:[#allocation8 + $0x50] sm:$0xff] }
  0xc2   :  { %v1106_v30 = vpack.c.bf16 %v683_v27, %v682_v26  ;;  %v1050_v26 = vpack.c.bf16 %v482_v23, %v480_v21  ;;  %v684_v21 = vld [vmem:[#allocation8 + $0x60] sm:$0xff]  ;;  %v685_v23 = vld [vmem:[#allocation8 + $0x68] sm:$0xff] }
  0xc4   :  { %947 = vmatpush1.bf16.msra.mxu1 %v946_v31  ;;  %v1108_v31 = vpack.c.bf16 %v701_v29, %v700_v28  ;;  %v484_v28 = vld [vmem:[#allocation7 + $0x300] sm:$0xff]  ;;  %v486_v29 = vld [vmem:[#allocation7 + $0x310] sm:$0xff] }
  0xc5   :  { %949 = vmatprep.subr.bf16.mxu1 %v948_v33  ;;  %v1373_v33 = vld [vmem:[%s1405_s2] sm:$0xf] }
  0xc6   :  { %v225_v34 = vrot.slane %v1373_v33, %v1361_v9  ;;  %v229_v35 = vrot.slane %v1373_v33, %v1351_v39  ;;  %v233_v10 = vrot.slane %v1373_v33, %v232_v2 }
  0xc8   :  { %951 = vmatpush1.bf16.msra.mxu1 %v950_v37 }
  0xc9   :  { %953 = vmatprep.subr.bf16.mxu1 %v952_v38  ;;  %v452_v38 = vld [vmem:[#allocation7 + $0x200] sm:$0xff] }
  0xca   :  { %v1022_v48 = vpack.c.bf16 %v454_v40, %v452_v38  ;;  %v495_v38 = vld [vmem:[#allocation7 + $0x358] sm:$0xff] }
  0xcc   :  { %955 = vmatpush1.bf16.msra.mxu1 %v954_v42  ;;  %v457_v42 = vld [vmem:[#allocation7 + $0x228] sm:$0xff] }
  0xcd   :  { %v1024_v49 = vpack.c.bf16 %v459_v43, %v457_v42  ;;  %v492_v42 = vld [vmem:[#allocation7 + $0x340] sm:$0xff]  ;;  %v494_v43 = vld [vmem:[#allocation7 + $0x350] sm:$0xff] }
  0xcf   :  { %378 = vmatmul.mubr.f32.vlgmr.msra.gmra.mrb[2].mxu1 %v1365_v22  ;;  %v1084_v22 = vpack.c.bf16 %v689_v57, %v688_v56  ;;  %v462_v56 = vld [vmem:[#allocation7 + $0x250] sm:$0xff]  ;;  %v465_v57 = vld [vmem:[#allocation7 + $0x268] sm:$0xff] }
  0xd0   :  { %v1032_v59 = vpack.c.bf16 %v467_v58, %v465_v57  ;;  %v505_v57 = vld [vmem:[#allocation7 + $0x3a8] sm:$0xff]  ;;  %v507_v58 = vld [vmem:[#allocation7 + $0x3b8] sm:$0xff] }
  0xd1   :  { %1085 = vmatprep.subr.bf16.mxu1 %v1084_v22  ;;  %v1030_v22 = vpack.c.bf16 %v462_v56, %v460_v55  ;;  %v500_v55 = vld [vmem:[#allocation7 + $0x380] sm:$0xff]  ;;  %v502_v56 = vld [vmem:[#allocation7 + $0x390] sm:$0xff] }
  0xd2   :  { %1087 = vmatpush3.bf16.msra.mxu1 %v1086_v62  ;;  %v469_v62 = vld [vmem:[#allocation7 + $0x288] sm:$0xff] }
  0xd3   :  { %1089 = vmatprep.subr.bf16.mxu1 %v1088_v63  ;;  %v471_v63 = vld [vmem:[#allocation7 + $0x298] sm:$0xff] }
  0xd4   :  { %v1036_v1 = vpack.c.bf16 %v471_v63, %v469_v62  ;;  %v509_v62 = vld [vmem:[#allocation7 + $0x3c8] sm:$0xff]  ;;  %v511_v63 = vld [vmem:[#allocation7 + $0x3d8] sm:$0xff] }
  0xd6   :  { %1091 = vmatpush3.bf16.msra.mxu1 %v1090_v4  ;;  %v473_v4 = vld [vmem:[#allocation7 + $0x2a8] sm:$0xff] }
  0xd7   :  { %1093 = vmatprep.subr.bf16.mxu1 %v1092_v5  ;;  %v475_v5 = vld [vmem:[#allocation7 + $0x2b8] sm:$0xff] }
  0xd8   :  { %v1040_v7 = vpack.c.bf16 %v475_v5, %v473_v4  ;;  %v510_v4 = vld [vmem:[#allocation7 + $0x3d0] sm:$0xff]  ;;  %v236_v5 = vsub.s32 3, %v1348_v32 }
  0xd9   :  { %v1078_v8 = vpack.c.bf16 %v510_v4, %v508_v3 }
  0xda   :  { %1095 = vmatpush3.bf16.msra.mxu1 %v1094_v11  ;;  %v477_v11 = vld [vmem:[#allocation7 + $0x2c8] sm:$0xff] }
  0xdb   :  { %1097 = vmatprep.subr.bf16.mxu1 %v1096_v12  ;;  %v479_v12 = vld [vmem:[#allocation7 + $0x2d8] sm:$0xff] }
  0xdc   :  { %v1044_v14 = vpack.c.bf16 %v479_v12, %v477_v11  ;;  %v512_v12 = vld [vmem:[#allocation7 + $0x3e0] sm:$0xff] }
  0xde   :  { %1099 = vmatpush3.bf16.msra.mxu1 %v1098_v17  ;;  %v481_v17 = vld [vmem:[#allocation7 + $0x2e8] sm:$0xff] }
  0xdf   :  { %1101 = vmatprep.subr.bf16.mxu1 %v1100_v18  ;;  %v483_v18 = vld [vmem:[#allocation7 + $0x2f8] sm:$0xff] }
  0xe0   :  { %v1048_v20 = vpack.c.bf16 %v483_v18, %v481_v17 }
  0xe2   :  { %1103 = vmatpush3.bf16.msra.mxu1 %v1102_v24  ;;  %v485_v24 = vld [vmem:[#allocation7 + $0x308] sm:$0xff] }
  0xe3   :  { %1105 = vmatprep.subr.bf16.mxu1 %v1104_v25  ;;  %v487_v25 = vld [vmem:[#allocation7 + $0x318] sm:$0xff] }
  0xe4   :  { %v1052_v27 = vpack.c.bf16 %v487_v25, %v485_v24  ;;  %v1110_v24 = vpack.c.bf16 %v685_v23, %v684_v21  ;;  %v702_v25 = vld [vmem:[#allocation8 + $0xf0] sm:$0xff] }
  0xe6   :  { %1107 = vmatpush3.bf16.msra.mxu1 %v1106_v30  ;;  %v489_v30 = vld [vmem:[#allocation7 + $0x328] sm:$0xff] }
  0xe7   :  { %1109 = vmatprep.subr.bf16.mxu1 %v1108_v31  ;;  %v491_v31 = vld [vmem:[#allocation7 + $0x338] sm:$0xff] }
  0xea   :  { %1111 = vmatpush3.bf16.msra.mxu1 %v1110_v24 }
 0x162   :  { %v308_v44 = vpop.f32.mrb[0].mxu1 }
 0x163   :  { %v309_v36 = vadd.f32 %v308_v44, %v225_v34  ;;  %v310_v37 = vpop.f32.mrb[1].mxu1  ;;  %v1054_v34 = vpack.c.bf16 %v486_v29, %v484_v28  ;;  %v488_v44 = vld [vmem:[#allocation7 + $0x320] sm:$0xff]  ;;  %v687_v28 = vld [vmem:[#allocation8 + $0x78] sm:$0xff] }
 0x164   :  { %v311_v41 = vadd.f32 %v310_v37, %v229_v35  ;;  %v1056_v35 = vpack.c.bf16 %v491_v31, %v489_v30  ;;  %v493_v37 = vld [vmem:[#allocation7 + $0x348] sm:$0xff]  ;;  %v516_v30 = vld [vmem:[%s1407_s4] sm:$0x3]  ;;  %s782_s4 = sshll.u32 %s1259_s9, 4  ;;  %s783_s4 = int_to_ptr.vmem [resolvable:$true] %s782_s4 }
 0x165   :  { %v384_v45 = vmax.f32 %v309_v36, 0.0  ;;  %v490_v36 = vld [vmem:[#allocation7 + $0x330] sm:$0xff]  ;;  %v521_v31 = vrot.slane %v516_v30, %v1361_v9  ;;  %s1219_s10 = scalar_lea.vmem %s783_s4, 16  ;;  %s1223_s11 = scalar_lea.vmem %s783_s4, 32 }
 0x166   :  { %v385_v46 = vmax.f32 %v311_v41, 0.0  ;;  %v1058_v40 = vpack.c.bf16 %v490_v36, %v488_v44  ;;  %v1060_v41 = vpack.c.bf16 %v495_v38, %v493_v37  ;;  %p1220_p4 = scmp.ne.s32.totalorder %s783_s4, %s1219_s10  ;;  %p1224_p5 = scmp.lt.s32.totalorder %s783_s4, %s783_s4 }
 0x167   :  { %p1225_p6 = scmp.lt.s32.totalorder %s1223_s11, %s1219_s10 }
 0x168   :  { %592 = vmatprep.mubr.f32.mxu0 %v385_v46  ;;  %v499_v46 = vld [vmem:[#allocation7 + $0x378] sm:$0xff] }
 0x169   :  { %593 = vmatmul.mubr.f32.vlgmr.msra.gmra.mrb[0].mxu0 %v384_v45  ;;  %v497_v45 = vld [vmem:[#allocation7 + $0x368] sm:$0xff]  ;;  %p1226_p7 = por %p1225_p6, %p1224_p5 }
 0x16a   :  { %1023 = vmatpush1.bf16.msra.mxu0 %v1022_v48  ;;  %v1062_v48 = vpack.c.bf16 %v494_v43, %v492_v42  ;;  %v704_v42 = vld [vmem:[%s1409_s6] sm:$0x1] }
 0x16b   :  { %1025 = vmatprep.subr.bf16.mxu0 %v1024_v49  ;;  %v1064_v49 = vpack.c.bf16 %v499_v46, %v497_v45  ;;  %p1227_p8 = pnand %p1226_p7, %p1220_p4 }
 0x16e   :  { %1027 = vmatpush1.bf16.msra.mxu0 %v1026_v54  ;;  %v1066_v54 = vpack.c.bf16 %v498_v51, %v496_v50 }
 0x16f   :  { %1029 = vmatprep.subr.bf16.mxu0 %v1028_v47  ;;  %v1068_v47 = vpack.c.bf16 %v503_v53, %v501_v52 }
 0x172   :  { %1031 = vmatpush1.bf16.msra.mxu0 %v1030_v22  ;;  %v1070_v22 = vpack.c.bf16 %v502_v56, %v500_v55 }
 0x173   :  { %1033 = vmatprep.subr.bf16.mxu0 %v1032_v59  ;;  %v1072_v59 = vpack.c.bf16 %v507_v58, %v505_v57 }
 0x176   :  { %1035 = vmatpush1.bf16.msra.mxu0 %v1034_v0  ;;  %v1074_v0 = vpack.c.bf16 %v506_v61, %v504_v60 }
 0x177   :  { %1037 = vmatprep.subr.bf16.mxu0 %v1036_v1  ;;  %v1076_v1 = vpack.c.bf16 %v511_v63, %v509_v62 }
 0x17a   :  { %1039 = vmatpush1.bf16.msra.mxu0 %v1038_v6  ;;  %v513_v6 = vld [vmem:[#allocation7 + $0x3e8] sm:$0xff] }
 0x17b   :  { %1041 = vmatprep.subr.bf16.mxu0 %v1040_v7  ;;  %v515_v7 = vld [vmem:[#allocation7 + $0x3f8] sm:$0xff] }
 0x17c   :  { %v1080_v11 = vpack.c.bf16 %v515_v7, %v513_v6 }
 0x17e   :  { %1043 = vmatpush1.bf16.msra.mxu0 %v1042_v13  ;;  %v514_v13 = vld [vmem:[#allocation7 + $0x3f0] sm:$0xff] }
 0x17f   :  { %1045 = vmatprep.subr.bf16.mxu0 %v1044_v14  ;;  %v237_v14 = vrot.slane %v1373_v33, %v236_v5  ;;  %v1082_v16 = vpack.c.bf16 %v514_v13, %v512_v12  ;;  %v686_v33 = vld [vmem:[#allocation8 + $0x70] sm:$0xff] }
 0x180   :  { %v1114_v29 = vpack.c.bf16 %v687_v28, %v686_v33 }
 0x182   :  { %1047 = vmatpush1.bf16.msra.mxu0 %v1046_v19 }
 0x183   :  { %1049 = vmatprep.subr.bf16.mxu0 %v1048_v20 }
 0x186   :  { %1051 = vmatpush1.bf16.msra.mxu0 %v1050_v26  ;;  %v703_v26 = vld [vmem:[#allocation8 + $0xf8] sm:$0xff] }
 0x187   :  { %1053 = vmatprep.subr.bf16.mxu0 %v1052_v27  ;;  %v1112_v27 = vpack.c.bf16 %v703_v26, %v702_v25 }
 0x189   :  { %1113 = vmatprep.subr.bf16.mxu1 %v1112_v27 }
 0x18a   :  { %1055 = vmatpush1.bf16.msra.mxu0 %v1054_v34  ;;  %1115 = vmatpush3.bf16.msra.mxu1 %v1114_v29  ;;  %v525_v34 = vrot.slane %v516_v30, %v1351_v39 }
 0x18b   :  { %1057 = vmatprep.subr.bf16.mxu0 %v1056_v35 }
 0x18e   :  { %1059 = vmatpush1.bf16.msra.mxu0 %v1058_v40 }
 0x18f   :  { %1061 = vmatprep.subr.bf16.mxu0 %v1060_v41 }
 0x192   :  { %1063 = vmatpush1.bf16.msra.mxu0 %v1062_v48 }
 0x193   :  { %1065 = vmatprep.subr.bf16.mxu0 %v1064_v49 }
 0x196   :  { %1067 = vmatpush1.bf16.msra.mxu0 %v1066_v54 }
 0x197   :  { %1069 = vmatprep.subr.bf16.mxu0 %v1068_v47 }
 0x19a   :  { %1071 = vmatpush1.bf16.msra.mxu0 %v1070_v22 }
 0x19b   :  { %1073 = vmatprep.subr.bf16.mxu0 %v1072_v59 }
 0x19e   :  { %1075 = vmatpush1.bf16.msra.mxu0 %v1074_v0 }
 0x19f   :  { %1077 = vmatprep.subr.bf16.mxu0 %v1076_v1 }
 0x1a2   :  { %v379_v15 = vpop.f32.mrb[2].mxu1  ;;  %1079 = vmatpush1.bf16.msra.mxu0 %v1078_v8 }
 0x1a3   :  { %v380_v17 = vadd.f32 %v379_v15, %v233_v10  ;;  %v381_v18 = vpop.f32.mrb[3].mxu1  ;;  %1081 = vmatprep.subr.bf16.mxu0 %v1080_v11 }
 0x1a4   :  { %v382_v19 = vadd.f32 %v381_v18, %v237_v14 }
 0x1a5   :  { %v386_v20 = vmax.f32 %v380_v17, 0.0 }
 0x1a6   :  { %v387_v32 = vmax.f32 %v382_v19, 0.0  ;;  %1083 = vmatpush1.bf16.msra.mxu0 %v1082_v16 }
 0x1a8   :  { %663 = vmatprep.mubr.f32.mxu0 %v387_v32 }
 0x1a9   :  { %664 = vmatmul.mubr.f32.vlgmr.msra.gmra.mrb[0].mxu0 %v386_v20 }
 0x27c   :  { %v665_v35 = vpop.f32.mrb[0].mxu0 }
 0x27d   :  { %v1116_v44 = vadd.f32 %v665_v35, %v521_v31  ;;  %v667_v36 = vpop.f32.mrb[1].mxu0 }
 0x27e   :  { %v1117_v37 = vadd.f32 %v667_v36, %v525_v34 }
 0x27f   :  { %v670_v40 = vmax.f32 %v1116_v44, 0.0 }
 0x280   :  { %v671_v38 = vmax.f32 %v1117_v37, 0.0 }
 0x282   :  { %769 = vmatprep.mubr.f32.mxu1 %v671_v38 }
 0x283   :  { %770 = vmatmul.mubr.f32.vlgmr.msra.gmra.mrb[4].mxu1 %v670_v40 }
 0x356   :  { %v825_v41 = vpop.f32.mrb[4].mxu1 }
 0x357   :  { %v826_v43 = vpop.f32.mrb[5].mxu1 }
 0x358   :  { %v827_v45 = vadd.f32 %v826_v43, %v825_v41 }
 0x35a   :  { %v772_v9 = vadd.f32 %v827_v45, %v704_v42 }
 0x35c   :  { %775 = vst [vmem:[#allocation10] sm:$0x1] %v772_v9 }
 0x35d   :  { %1230 = shalt.err (!%p1227_p8)
}
 0x35e   :  { %s1231_s13 = scalar_lea.hbm %s1410_s7, 16 }
 0x35f   :  { %p1232_p9 = scmp.ne.s32.totalorder %s1410_s7, %s1231_s13  ;;  %p1235_p10 = scmp.lt.u32.totalorder %s1231_s13, %s1410_s7 }
 0x361   :  { %p1237_p11 = pnand %p1235_p10, %p1232_p9 }
 0x363   :  { %1240 = shalt.err (!%p1237_p11)
}
 0x364   :  { %785 = dma.vmem_to_hbm [thread:$0]  %s783_s4, 16, %s1410_s7, [#allocation4]  }
 0x365   :  { %1247 = dma.done.wait [#allocation4], 16  }
 0x366   :  { %1248 = vsyncadd [#allocation4], 4294967280 }
 0x367   :  { %789 = vsyncpa [#allocation3], 1 }
 0x368   :  { %790 = vsyncpa [#allocation6], 1 }
 0x369   :  { %791 = vsyncpa [#allocation9], 1 }
 0x36a   :  { %792 = vsyncpa [#allocation4], 1 }

</bundles_post_ra>
